<compile_context>
chip_gen: v7x
topology: tpu7x:2x2x1
jax: 0.10.0
libtpu: 0.0.40
codegen_flags: <defaults>
</compile_context>

<pallas_src>
import jax
import jax.numpy as jnp
from jax.experimental import pallas as pl
from jax.experimental.pallas import tpu as pltpu


def _round_up(x, m):
    return (x + m - 1) // m * m


def lora_lin_kernel(x_ref, w1t_ref, w2t_ref, b_ref, o_ref, acc_ref):
    """grid = (batch tiles, K tiles).  acc accumulates h = x @ W1^T in f32."""
    k = pl.program_id(1)

    @pl.when(k == 0)
    def _():
        acc_ref[...] = jnp.zeros_like(acc_ref)

    # f32 accumulation on the MXU regardless of the streaming dtype.
    acc_ref[...] += jnp.dot(
        x_ref[...], w1t_ref[...], preferred_element_type=jnp.float32
    )

    @pl.when(k == pl.num_programs(1) - 1)
    def _():
        # Cast h back to the streaming dtype so bf16 inputs stay on the MXU's
        # native bf16 path; the second matmul also accumulates in f32.
        h = acc_ref[...].astype(w2t_ref.dtype)
        y = jnp.dot(h, w2t_ref[...], preferred_element_type=jnp.float32)
        o_ref[...] = (y + b_ref[...]).astype(o_ref.dtype)


def prepare_lora_params(w1, w2, b=None, dtype=jnp.float32):
    """One-time parameter prep (hoisted out of the per-call path).

    w1: (rank, in_features)   -- linear1.weight
    w2: (out_features, rank)  -- linear2.weight
    b : (out_features,) or None

    Returns (w1t, w2t, b2d):
      w1t: (in_features, rank_p)   pre-transposed, rank zero-padded to 128 lanes
      w2t: (rank_p, out_features)  pre-transposed, rank rows zero-padded
      b2d: (1, out_features)       f32 bias row (zeros if b is None)
    """
    rank, _in_features = w1.shape
    out_features, _ = w2.shape
    rank_p = _round_up(rank, 128)
    w1t = jnp.pad(w1.T.astype(dtype), ((0, 0), (0, rank_p - rank)))
    w2t = jnp.pad(w2.T.astype(dtype), ((0, rank_p - rank), (0, 0)))
    if b is None:
        b2d = jnp.zeros((1, out_features), jnp.float32)
    else:
        b2d = b.astype(jnp.float32).reshape(1, out_features)
    return w1t, w2t, b2d


def lora_lin_apply(x, w1t, w2t, b2d, *, max_batch_tile=1024):
    """y = (x @ W1.T) @ W2.T + b with pre-prepared params. x: (..., in)."""
    orig_shape = x.shape
    if x.ndim != 2:
        x = x.reshape(-1, orig_shape[-1])  # nn.Linear acts on the last dim
    batch, in_features = x.shape
    assert w1t.shape[0] == in_features
    rank_p = w1t.shape[1]
    out_features = w2t.shape[1]
    xbytes = jnp.dtype(x.dtype).itemsize

    # ---- per-generation VMEM budget ----------------------------------------
    try:
        physical_vmem = int(pltpu.get_tpu_info().vmem_capacity_bytes)
    except Exception:
        physical_vmem = 64 << 20          # conservative (v7x-sized) fallback
    vmem_budget = physical_vmem * 3 // 4  # ~96 MiB on v5e/v6e, ~48 MiB on v7x

    # ---- contraction (K) tiling ---------------------------------------------
    # Keep all of in_features resident for modest sizes; for very large layers
    # tile the contraction so the double-buffered x tile stays small (v7x).
    tk = in_features
    if in_features > 4096:
        for cand in (2048, 1024, 512, 256, 128):
            if in_features % cand == 0:
                tk = cand
                break
    num_k = pl.cdiv(in_features, tk)

    # Grid-invariant operands are single-buffered (W1^T only when not K-tiled).
    weight_bytes = (
        (1 if num_k == 1 else 2) * tk * rank_p * xbytes   # W1^T
        + rank_p * out_features * xbytes                   # W2^T (single buffer)
        + out_features * 4                                 # bias (f32)
    )

    def vmem_need(tb):
        return (
            2 * tb * tk * xbytes               # double-buffered x tiles
            + 2 * tb * out_features * xbytes   # double-buffered y tiles
            + tb * rank_p * 4                  # f32 accumulator scratch
            + weight_bytes
            + (2 << 20)                        # compiler scratch headroom
        )

    # ---- batch tile: largest multiple of 8 that fits the budget -------------
    tb = min(max_batch_tile, _round_up(batch, 8))
    while tb > 8 and vmem_need(tb) > vmem_budget:
        tb -= 8
    # Force >= 2 batch steps when possible so the "parallel" axis can be split
    # across v7x's two TensorCores and DMA/compute actually overlap (harmless
    # on single-TC v5e/v6e).
    if batch >= 16 and pl.cdiv(batch, tb) < 2:
        tb = _round_up(pl.cdiv(batch, 2), 8)

    grid = (pl.cdiv(batch, tb), num_k)
    vmem_limit = int(
        min(max(vmem_need(tb), vmem_budget), physical_vmem - (8 << 20))
    )

    cost = pl.CostEstimate(
        flops=2 * batch * rank_p * (in_features + out_features),
        transcendentals=0,
        bytes_accessed=batch * (in_features + out_features) * xbytes
        + (in_features * rank_p + rank_p * out_features) * xbytes
        + out_features * 4,
    )

    def build(single_buffer_resident):
        def resident(block_shape, index_map):
            # Grid-invariant operand: single buffer halves its VMEM footprint.
            if single_buffer_resident:
                return pl.BlockSpec(
                    block_shape, index_map, pipeline_mode=pl.Buffered(1)
                )
            return pl.BlockSpec(block_shape, index_map)

        if num_k == 1:
            w1t_spec = resident((tk, rank_p), lambda i, k: (0, 0))
        else:
            w1t_spec = pl.BlockSpec((tk, rank_p), lambda i, k: (k, 0))

        # NOTE: a partial last batch tile reads undefined rows of x; they only
        # produce garbage in output rows that are never written back, so it is
        # intentionally left unmasked.
        return pl.pallas_call(
            lora_lin_kernel,
            out_shape=jax.ShapeDtypeStruct((batch, out_features), x.dtype),
            grid_spec=pltpu.PrefetchScalarGridSpec(
                num_scalar_prefetch=0,
                grid=grid,
                in_specs=[
                    pl.BlockSpec((tb, tk), lambda i, k: (i, k)),            # streamed x
                    w1t_spec,                                               # W1^T
                    resident((rank_p, out_features), lambda i, k: (0, 0)),  # W2^T
                    resident((1, out_features), lambda i, k: (0, 0)),       # bias
                ],
                # Unpadded output: masked store on the tail lane group only,
                # so no extra XLA slice pass over y afterwards.
                out_specs=pl.BlockSpec((tb, out_features), lambda i, k: (i, 0)),
                scratch_shapes=[pltpu.VMEM((tb, rank_p), jnp.float32)],
            ),
            compiler_params=pltpu.CompilerParams(
                dimension_semantics=("parallel", "arbitrary"),
                vmem_limit_bytes=vmem_limit,
            ),
            cost_estimate=cost,
        )

    try:
        out = build(True)(x, w1t, w2t, b2d)
    except Exception:
        # pipeline_mode=pl.Buffered(1) unsupported on this jax version:
        # fall back to default double-buffering (costs extra VMEM only).
        out = build(False)(x, w1t, w2t, b2d)

    if len(orig_shape) != 2:
        out = out.reshape(*orig_shape[:-1], out_features)
    return out


def lora_lin(x, w1, w2, b=None, **kwargs):
    """Convenience one-shot (callers should hoist prepare_lora_params)."""
    w1t, w2t, b2d = prepare_lora_params(w1, w2, b, dtype=x.dtype)
    return lora_lin_apply(x, w1t, w2t, b2d, **kwargs)


if __name__ == "__main__":
    # Small shapes consistent with nn.Linear semantics.
    batch, in_features, rank, out_features = 8, 32, 4, 16

    key = jax.random.PRNGKey(0)
    kx, k1, k2, kb = jax.random.split(key, 4)

    x = jax.random.normal(kx, (batch, in_features), dtype=jnp.float32)
    # PyTorch layout: weight is (out, in).
    w1 = jax.random.normal(k1, (rank, in_features), dtype=jnp.float32) * 0.1
    w2 = jax.random.normal(k2, (out_features, rank), dtype=jnp.float32) * 0.1
    b = jax.random.normal(kb, (out_features,), dtype=jnp.float32) * 0.1

    # One-time (hoisted) parameter prep, then the streamed kernel.
    w1t, w2t, b2d = prepare_lora_params(w1, w2, b, dtype=x.dtype)
    out = lora_lin_apply(x, w1t, w2t, b2d)
    jax.block_until_ready(out)

    # Reference check in plain JAX.
    ref = (x @ w1.T) @ w2.T + b
    assert out.shape == (batch, out_features)
    assert jnp.allclose(out, ref, atol=1e-4, rtol=1e-4)

    print("KERNEL_OK")
</pallas_src>

<mosaic_0001>
module attributes {stable_mosaic.version = 11 : i64} {
  func.func @lora_lin_kernel(%arg0: i32, %arg1: i32, %arg2: memref<8x32xf32, #tpu.memory_space<vmem>>, %arg3: memref<32x128xf32, #tpu.memory_space<vmem>>, %arg4: memref<128x16xf32, #tpu.memory_space<vmem>>, %arg5: memref<1x16xf32, #tpu.memory_space<vmem>>, %arg6: memref<8x16xf32, #tpu.memory_space<vmem>>, %arg7: memref<8x128xf32, #tpu.memory_space<vmem>>) attributes {dimension_semantics = [#tpu.dimension_semantics<parallel>, #tpu.dimension_semantics<arbitrary>], iteration_bounds = array<i64: 1, 1>, scalar_prefetch = 0 : i64, scratch_operands = 1 : i64, tpu.core_type = #tpu.core_type<tc>, window_params = [{transform_indices = @transform_0, window_bounds = array<i64: 8, 32>}, {pipeline_mode = #tpu.pipeline_mode<synchronous>, transform_indices = @transform_1, window_bounds = array<i64: 32, 128>}, {pipeline_mode = #tpu.pipeline_mode<synchronous>, transform_indices = @transform_2, window_bounds = array<i64: 128, 16>}, {pipeline_mode = #tpu.pipeline_mode<synchronous>, transform_indices = @transform_3, window_bounds = array<i64: 1, 16>}, {transform_indices = @transform_4, window_bounds = array<i64: 8, 16>}]} {
    %c0_i32 = arith.constant 0 : i32
    %0 = arith.cmpi eq, %arg1, %c0_i32 : i32
    %1 = arith.extui %0 : i1 to i32
    %c0_i32_0 = arith.constant 0 : i32
    %2 = arith.cmpi ne, %1, %c0_i32_0 : i32
    scf.if %2 {
      %cst_10 = arith.constant 0.000000e+00 : f32
      %12 = vector.broadcast %cst_10 : f32 to vector<8x128xf32>
      %c0_11 = arith.constant 0 : index
      %c0_12 = arith.constant 0 : index
      %13 = vector.load %arg7[%c0_11, %c0_12] : memref<8x128xf32, #tpu.memory_space<vmem>>, vector<8x128xf32>
      tpu.vector_store %arg7[%c0_11, %c0_12], %12 {strides = array<i32>} : memref<8x128xf32, #tpu.memory_space<vmem>>, vector<8x128xf32>,
    } else {
    }
    %c0 = arith.constant 0 : index
    %c0_1 = arith.constant 0 : index
    %3 = vector.load %arg7[%c0, %c0_1] : memref<8x128xf32, #tpu.memory_space<vmem>>, vector<8x128xf32>
    %c0_2 = arith.constant 0 : index
    %c0_3 = arith.constant 0 : index
    %4 = vector.load %arg2[%c0_2, %c0_3] : memref<8x32xf32, #tpu.memory_space<vmem>>, vector<8x32xf32>
    %c0_4 = arith.constant 0 : index
    %c0_5 = arith.constant 0 : index
    %5 = vector.load %arg3[%c0_4, %c0_5] : memref<32x128xf32, #tpu.memory_space<vmem>>, vector<32x128xf32>
    %cst = arith.constant dense<0.000000e+00> : vector<8x128xf32>
    %6 = tpu.matmul %4, %5, %cst {dimension_numbers = #tpu.dot_dimension_numbers<[1], [0], [0], [1], [0, 0, 1, 1], [], []>} : vector<8x32xf32>, vector<32x128xf32>, vector<8x128xf32> -> vector<8x128xf32>
    %7 = arith.addf %3, %6 : vector<8x128xf32>
    %c0_6 = arith.constant 0 : index
    %c0_7 = arith.constant 0 : index
    %8 = vector.load %arg7[%c0_6, %c0_7] : memref<8x128xf32, #tpu.memory_space<vmem>>, vector<8x128xf32>
    tpu.vector_store %arg7[%c0_6, %c0_7], %7 {strides = array<i32>} : memref<8x128xf32, #tpu.memory_space<vmem>>, vector<8x128xf32>,
    %c0_i32_8 = arith.constant 0 : i32
    %9 = arith.cmpi eq, %arg1, %c0_i32_8 : i32
    %10 = arith.extui %9 : i1 to i32
    %c0_i32_9 = arith.constant 0 : i32
    %11 = arith.cmpi ne, %10, %c0_i32_9 : i32
    scf.if %11 {
      %c0_10 = arith.constant 0 : index
      %c0_11 = arith.constant 0 : index
      %12 = vector.load %arg7[%c0_10, %c0_11] : memref<8x128xf32, #tpu.memory_space<vmem>>, vector<8x128xf32>
      %c0_12 = arith.constant 0 : index
      %c0_13 = arith.constant 0 : index
      %13 = vector.load %arg4[%c0_12, %c0_13] : memref<128x16xf32, #tpu.memory_space<vmem>>, vector<128x16xf32>
      %cst_14 = arith.constant dense<0.000000e+00> : vector<8x16xf32>
      %14 = tpu.matmul %12, %13, %cst_14 {dimension_numbers = #tpu.dot_dimension_numbers<[1], [0], [0], [1], [0, 0, 1, 1], [], []>} : vector<8x128xf32>, vector<128x16xf32>, vector<8x16xf32> -> vector<8x16xf32>
      %c0_15 = arith.constant 0 : index
      %c0_16 = arith.constant 0 : index
      %15 = vector.load %arg5[%c0_15, %c0_16] : memref<1x16xf32, #tpu.memory_space<vmem>>, vector<1x16xf32>
      %16 = vector.broadcast %15 : vector<1x16xf32> to vector<8x16xf32>
      %17 = arith.addf %14, %16 : vector<8x16xf32>
      %c0_17 = arith.constant 0 : index
      %c0_18 = arith.constant 0 : index
      %18 = vector.load %arg6[%c0_17, %c0_18] : memref<8x16xf32, #tpu.memory_space<vmem>>, vector<8x16xf32>
      tpu.vector_store %arg6[%c0_17, %c0_18], %17 {strides = array<i32>} : memref<8x16xf32, #tpu.memory_space<vmem>>, vector<8x16xf32>,
    } else {
    }
    return
  }
  func.func @transform_0(%arg0: i32, %arg1: i32) -> (i32, i32) {
    %c0_i32 = arith.constant 0 : i32
    return %arg0, %arg1 : i32, i32
  }
  func.func @transform_1(%arg0: i32, %arg1: i32) -> (i32, i32) {
    %c0_i32 = arith.constant 0 : i32
    %c0_i32_0 = arith.constant 0 : i32
    %c0_i32_1 = arith.constant 0 : i32
    return %c0_i32, %c0_i32_0 : i32, i32
  }
  func.func @transform_2(%arg0: i32, %arg1: i32) -> (i32, i32) {
    %c0_i32 = arith.constant 0 : i32
    %c0_i32_0 = arith.constant 0 : i32
    %c0_i32_1 = arith.constant 0 : i32
    return %c0_i32, %c0_i32_0 : i32, i32
  }
  func.func @transform_3(%arg0: i32, %arg1: i32) -> (i32, i32) {
    %c0_i32 = arith.constant 0 : i32
    %c0_i32_0 = arith.constant 0 : i32
    %c0_i32_1 = arith.constant 0 : i32
    return %c0_i32, %c0_i32_0 : i32, i32
  }
  func.func @transform_4(%arg0: i32, %arg1: i32) -> (i32, i32) {
    %c0_i32 = arith.constant 0 : i32
    %c0_i32_0 = arith.constant 0 : i32
    return %arg0, %c0_i32 : i32, i32
  }
}

module attributes {stable_mosaic.version = 11 : i64} {
  func.func @lora_lin_kernel(%arg0: i32, %arg1: i32, %arg2: memref<8x32xf32, #tpu.memory_space<vmem>>, %arg3: memref<32x128xf32, #tpu.memory_space<vmem>>, %arg4: memref<128x16xf32, #tpu.memory_space<vmem>>, %arg5: memref<1x16xf32, #tpu.memory_space<vmem>>, %arg6: memref<8x16xf32, #tpu.memory_space<vmem>>, %arg7: memref<8x128xf32, #tpu.memory_space<vmem>>) attributes {dimension_semantics = [#tpu.dimension_semantics<parallel>, #tpu.dimension_semantics<arbitrary>], iteration_bounds = array<i64: 1, 1>, scalar_prefetch = 0 : i64, scratch_operands = 1 : i64, tpu.core_type = #tpu.core_type<tc>, window_params = [{transform_indices = @transform_0, window_bounds = array<i64: 8, 32>}, {pipeline_mode = #tpu.pipeline_mode<synchronous>, transform_indices = @transform_1, window_bounds = array<i64: 32, 128>}, {pipeline_mode = #tpu.pipeline_mode<synchronous>, transform_indices = @transform_2, window_bounds = array<i64: 128, 16>}, {pipeline_mode = #tpu.pipeline_mode<synchronous>, transform_indices = @transform_3, window_bounds = array<i64: 1, 16>}, {transform_indices = @transform_4, window_bounds = array<i64: 8, 16>}]} {
    %c0_i32 = arith.constant 0 : i32
    %0 = arith.cmpi eq, %arg1, %c0_i32 : i32
    %1 = arith.extui %0 : i1 to i32
    %c0_i32_0 = arith.constant 0 : i32
    %2 = arith.cmpi ne, %1, %c0_i32_0 : i32
    scf.if %2 {
      %cst_10 = arith.constant 0.000000e+00 : f32
      %12 = vector.broadcast %cst_10 : f32 to vector<8x128xf32>
      %c0_11 = arith.constant 0 : index
      %c0_12 = arith.constant 0 : index
      %13 = vector.load %arg7[%c0_11, %c0_12] : memref<8x128xf32, #tpu.memory_space<vmem>>, vector<8x128xf32>
      tpu.vector_store %arg7[%c0_11, %c0_12], %12 {strides = array<i32>} : memref<8x128xf32, #tpu.memory_space<vmem>>, vector<8x128xf32>,
    } else {
    }
    %c0 = arith.constant 0 : index
    %c0_1 = arith.constant 0 : index
    %3 = vector.load %arg7[%c0, %c0_1] : memref<8x128xf32, #tpu.memory_space<vmem>>, vector<8x128xf32>
    %c0_2 = arith.constant 0 : index
    %c0_3 = arith.constant 0 : index
    %4 = vector.load %arg2[%c0_2, %c0_3] : memref<8x32xf32, #tpu.memory_space<vmem>>, vector<8x32xf32>
    %c0_4 = arith.constant 0 : index
    %c0_5 = arith.constant 0 : index
    %5 = vector.load %arg3[%c0_4, %c0_5] : memref<32x128xf32, #tpu.memory_space<vmem>>, vector<32x128xf32>
    %cst = arith.constant dense<0.000000e+00> : vector<8x128xf32>
    %6 = tpu.matmul %4, %5, %cst {dimension_numbers = #tpu.dot_dimension_numbers<[1], [0], [0], [1], [0, 0, 1, 1], [], []>} : vector<8x32xf32>, vector<32x128xf32>, vector<8x128xf32> -> vector<8x128xf32>
    %7 = arith.addf %3, %6 : vector<8x128xf32>
    %c0_6 = arith.constant 0 : index
    %c0_7 = arith.constant 0 : index
    %8 = vector.load %arg7[%c0_6, %c0_7] : memref<8x128xf32, #tpu.memory_space<vmem>>, vector<8x128xf32>
    tpu.vector_store %arg7[%c0_6, %c0_7], %7 {strides = array<i32>} : memref<8x128xf32, #tpu.memory_space<vmem>>, vector<8x128xf32>,
    %c0_i32_8 = arith.constant 0 : i32
    %9 = arith.cmpi eq, %arg1, %c0_i32_8 : i32
    %10 = arith.extui %9 : i1 to i32
    %c0_i32_9 = arith.constant 0 : i32
    %11 = arith.cmpi ne, %10, %c0_i32_9 : i32
    scf.if %11 {
      %c0_10 = arith.constant 0 : index
      %c0_11 = arith.constant 0 : index
      %12 = vector.load %arg7[%c0_10, %c0_11] : memref<8x128xf32, #tpu.memory_space<vmem>>, vector<8x128xf32>
      %c0_12 = arith.constant 0 : index
      %c0_13 = arith.constant 0 : index
      %13 = vector.load %arg4[%c0_12, %c0_13] : memref<128x16xf32, #tpu.memory_space<vmem>>, vector<128x16xf32>
      %cst_14 = arith.constant dense<0.000000e+00> : vector<8x16xf32>
      %14 = tpu.matmul %12, %13, %cst_14 {dimension_numbers = #tpu.dot_dimension_numbers<[1], [0], [0], [1], [0, 0, 1, 1], [], []>} : vector<8x128xf32>, vector<128x16xf32>, vector<8x16xf32> -> vector<8x16xf32>
      %c0_15 = arith.constant 0 : index
      %c0_16 = arith.constant 0 : index
      %15 = vector.load %arg5[%c0_15, %c0_16] : memref<1x16xf32, #tpu.memory_space<vmem>>, vector<1x16xf32>
      %16 = vector.broadcast %15 : vector<1x16xf32> to vector<8x16xf32>
      %17 = arith.addf %14, %16 : vector<8x16xf32>
      %c0_17 = arith.constant 0 : index
      %c0_18 = arith.constant 0 : index
      %18 = vector.load %arg6[%c0_17, %c0_18] : memref<8x16xf32, #tpu.memory_space<vmem>>, vector<8x16xf32>
      tpu.vector_store %arg6[%c0_17, %c0_18], %17 {strides = array<i32>} : memref<8x16xf32, #tpu.memory_space<vmem>>, vector<8x16xf32>,
    } else {
    }
    return
  }
  func.func @transform_0(%arg0: i32, %arg1: i32) -> (i32, i32) {
    %c0_i32 = arith.constant 0 : i32
    return %arg0, %arg1 : i32, i32
  }
  func.func @transform_1(%arg0: i32, %arg1: i32) -> (i32, i32) {
    %c0_i32 = arith.constant 0 : i32
    %c0_i32_0 = arith.constant 0 : i32
    %c0_i32_1 = arith.constant 0 : i32
    return %c0_i32, %c0_i32_0 : i32, i32
  }
  func.func @transform_2(%arg0: i32, %arg1: i32) -> (i32, i32) {
    %c0_i32 = arith.constant 0 : i32
    %c0_i32_0 = arith.constant 0 : i32
    %c0_i32_1 = arith.constant 0 : i32
    return %c0_i32, %c0_i32_0 : i32, i32
  }
  func.func @transform_3(%arg0: i32, %arg1: i32) -> (i32, i32) {
    %c0_i32 = arith.constant 0 : i32
    %c0_i32_0 = arith.constant 0 : i32
    %c0_i32_1 = arith.constant 0 : i32
    return %c0_i32, %c0_i32_0 : i32, i32
  }
  func.func @transform_4(%arg0: i32, %arg1: i32) -> (i32, i32) {
    %c0_i32 = arith.constant 0 : i32
    %c0_i32_0 = arith.constant 0 : i32
    return %arg0, %c0_i32 : i32, i32
  }
}

</mosaic_0001>

<bundles_post_ra>
// kernel: tpu_custom_call.1
= control target key start
LH: loop header
LB: loop body
LE: loop exit
PB: predicated region body
PF: predicated region fallthrough
CT: control target
= control target key end

     0   :  { %v346_v3 = vmov 0.0|0.0   ;;  %vm347_vm0 = vmmov 0   ;;  %v348_v6 = vmov 0.0   ;;  %vm29_vm1 = vcmask 261120   ;;  %s453_s0 = inlined_call_operand.vmem [shape: f32[8,32], index: 0, kind: input, shape index: {}]   ;;  %s454_s1 = inlined_call_operand.vmem [shape: f32[32,128], index: 1, kind: input, shape index: {}]   ;;  %s455_s2 = inlined_call_operand.vmem [shape: f32[128,16], index: 2, kind: input, shape index: {}]   ;;  %s456_s3 = inlined_call_operand.vmem [shape: f32[1,16], index: 3, kind: input, shape index: {}]   ;;  %s457_s4 = inlined_call_operand.hbm [shape: f32[8,16], index: 4, kind: output, shape index: {}]  }
   0x1   :  { %v25_v0 = vld [vmem:[%s454_s1] sm:$0xff]  ;;  %v26_v1 = vld [vmem:[%s454_s1 + $0x8] sm:$0xff]  ;;  %v27_v2 = vld [vmem:[%s454_s1 + $0x10] sm:$0xff]  ;;  %288 = vmatprep.subr.bf16.mxu0 %v346_v3  ;;  %250 = vmatprep.mubr.msk.f32.mxu0 %vm347_vm0, %v348_v6 }
   0x2   :  { %v289_v4 = vpack.c.bf16 %v26_v1, %v25_v0  ;;  %v28_v5 = vld [vmem:[%s454_s1 + $0x18] sm:$0xff]  ;;  %v109_v7 = vld [vmem:[%s455_s2] sm:$0xff]  ;;  %294 = vmatprep.subr.bf16.mxu1 %v346_v3  ;;  %v110_v8 = vld [vmem:[%s455_s2 + $0x8] sm:$0xff]  ;;  %285 = vmatprep.mubr.msk.f32.mxu1 %vm347_vm0, %v348_v6 }
   0x3   :  { %v111_v9 = vld [vmem:[%s455_s2 + $0x10] sm:$0xff]  ;;  %v112_v10 = vld [vmem:[%s455_s2 + $0x18] sm:$0xff]  ;;  %v292_v11 = vpack.c.bf16 %v28_v5, %v27_v2  ;;  %v295_v12 = vpack.c.bf16 %v110_v8, %v109_v7  ;;  %v113_v14 = vld [vmem:[%s455_s2 + $0x20] sm:$0xff] }
   0x4   :  { %290 = vmatpush3.bf16.msra.mxu0 %v289_v4  ;;  %v298_v13 = vpack.c.bf16 %v112_v10, %v111_v9  ;;  %v114_v15 = vld [vmem:[%s455_s2 + $0x28] sm:$0xff]  ;;  %v24_v16 = vld [vmem:[%s453_s0] sm:$0xff] }
   0x5   :  { %291 = vmatprep.subr.bf16.mxu0 %v346_v3  ;;  %296 = vmatpush3.bf16.msra.mxu1 %v295_v12 }
   0x6   :  { %297 = vmatprep.subr.bf16.mxu1 %v346_v3 }
   0x8   :  { %293 = vmatpush3.bf16.msra.mxu0 %v292_v11 }
   0x9   :  { %9 = vsyncpa [#allocation4], 0  ;;  %299 = vmatpush3.bf16.msra.mxu1 %v298_v13  ;;  %v301_v17 = vpack.c.bf16 %v114_v15, %v113_v14  ;;  %v115_v18 = vld [vmem:[%s455_s2 + $0x30] sm:$0xff]  ;;  %v116_v19 = vld [vmem:[%s455_s2 + $0x38] sm:$0xff]  ;;  %s349_s1 = smov [#allocation3]   ;;  %vm202_vm2 = vcmask 130048  }
   0xa   :  { %300 = vmatprep.subr.bf16.mxu1 %v346_v3  ;;  %v304_v20 = vpack.c.bf16 %v116_v19, %v115_v18  ;;  %v117_v21 = vld [vmem:[%s455_s2 + $0x40] sm:$0xff]  ;;  %v118_v22 = vld [vmem:[%s455_s2 + $0x48] sm:$0xff]  ;;  %v119_v24 = vld [vmem:[%s455_s2 + $0x50] sm:$0xff]  ;;  %s210_s5 = sshll.u32 %s349_s1, 4  ;;  %s211_s5 = int_to_ptr.vmem [resolvable:$true] %s210_s5 }
   0xb   :  { %251 = vmatmul.mubr.msk.f32.vlgmr.msra.gmra.mrb[0].mxu0 %vm29_vm1, %v24_v16  ;;  %v307_v23 = vpack.c.bf16 %v118_v22, %v117_v21  ;;  %v120_v25 = vld [vmem:[%s455_s2 + $0x58] sm:$0xff]  ;;  %v121_v27 = vld [vmem:[%s455_s2 + $0x60] sm:$0xff]  ;;  %v122_v28 = vld [vmem:[%s455_s2 + $0x68] sm:$0xff]  ;;  %p327_p1 = scmp.lt.s32.totalorder %s211_s5, %s211_s5 }
   0xc   :  { %v310_v26 = vpack.c.bf16 %v120_v25, %v119_v24  ;;  %v313_v29 = vpack.c.bf16 %v122_v28, %v121_v27  ;;  %v123_v30 = vld [vmem:[%s455_s2 + $0x70] sm:$0xff]  ;;  %v124_v31 = vld [vmem:[%s455_s2 + $0x78] sm:$0xff]  ;;  %v219_v35 = vld [vmem:[%s456_s3] ss:$0 sm:$0xff]  ;;  %s322_s2 = scalar_lea.vmem %s211_s5, 128 }
   0xd   :  { %302 = vmatpush3.bf16.msra.mxu1 %v301_v17  ;;  %v316_v32 = vpack.c.bf16 %v124_v31, %v123_v30  ;;  %p323_p0 = scmp.ne.s32.totalorder %s211_s5, %s322_s2  ;;  %p328_p2 = scmp.lt.s32.totalorder %s322_s2, %s322_s2 }
   0xe   :  { %303 = vmatprep.subr.bf16.mxu1 %v346_v3 }
   0xf   :  { %p329_p3 = por %p328_p2, %p327_p1 }
  0x11   :  { %305 = vmatpush3.bf16.msra.mxu1 %v304_v20  ;;  %p330_p4 = pnand %p329_p3, %p323_p0 }
  0x12   :  { %306 = vmatprep.subr.bf16.mxu1 %v346_v3 }
  0x15   :  { %308 = vmatpush3.bf16.msra.mxu1 %v307_v23 }
  0x16   :  { %309 = vmatprep.subr.bf16.mxu1 %v346_v3 }
  0x19   :  { %311 = vmatpush3.bf16.msra.mxu1 %v310_v26 }
  0x1a   :  { %312 = vmatprep.subr.bf16.mxu1 %v346_v3 }
  0x1d   :  { %314 = vmatpush3.bf16.msra.mxu1 %v313_v29 }
  0x1e   :  { %315 = vmatprep.subr.bf16.mxu1 %v346_v3 }
  0x21   :  { %317 = vmatpush3.bf16.msra.mxu1 %v316_v32 }
  0xde   :  { %v99_v33 = vpop.f32.mrb[0].mxu0 }
  0xdf   :  { %v252_v34 = vpop.f32.mrb[1].mxu0  ;;  %286 = vmatmul.mubr.f32.vlgmr.msra.gmra.mrb[0].mxu1 %v99_v33 }
 0x1b2   :  { %v198_v36 = vpop.f32.mrb[0].mxu1 }
 0x1b3   :  { %v199_v37 = vadd.f32 %v219_v35, %v198_v36  ;;  %v287_v38 = vpop.f32.mrb[1].mxu1 }
 0x1b5   :  { %203 = vst.msk [vmem:[#allocation3] sm:$0xff] %vm202_vm2, %v199_v37 }
 0x1b6   :  { %333 = shalt.err (!%p330_p4)
}
 0x1b7   :  { %s334_s8 = scalar_lea.hbm %s457_s4, 128 }
 0x1b8   :  { %p335_p5 = scmp.ne.s32.totalorder %s457_s4, %s334_s8  ;;  %p338_p6 = scmp.lt.u32.totalorder %s334_s8, %s457_s4 }
 0x1ba   :  { %p340_p7 = pnand %p338_p6, %p335_p5 }
 0x1bc   :  { %343 = shalt.err (!%p340_p7)
}
 0x1bd   :  { %213 = dma.vmem_to_hbm [thread:$0]  %s211_s5, 128, %s457_s4, [#allocation4]  }
 0x1be   :  { %344 = dma.done.wait [#allocation4], 128  }
 0x1bf   :  { %345 = vsyncadd [#allocation4], 4294967168 }
 0x1c0   :  { %217 = vsyncpa [#allocation4], 1 }

// kernel: tpu_custom_call.1
= control target key start
LH: loop header
LB: loop body
LE: loop exit
PB: predicated region body
PF: predicated region fallthrough
CT: control target
= control target key end

     0   :  { %v346_v3 = vmov 0.0|0.0   ;;  %vm347_vm0 = vmmov 0   ;;  %v348_v6 = vmov 0.0   ;;  %vm29_vm1 = vcmask 261120   ;;  %s453_s0 = inlined_call_operand.vmem [shape: f32[8,32], index: 0, kind: input, shape index: {}]   ;;  %s454_s1 = inlined_call_operand.vmem [shape: f32[32,128], index: 1, kind: input, shape index: {}]   ;;  %s455_s2 = inlined_call_operand.vmem [shape: f32[128,16], index: 2, kind: input, shape index: {}]   ;;  %s456_s3 = inlined_call_operand.vmem [shape: f32[1,16], index: 3, kind: input, shape index: {}]   ;;  %s457_s4 = inlined_call_operand.hbm [shape: f32[8,16], index: 4, kind: output, shape index: {}]  }
   0x1   :  { %v25_v0 = vld [vmem:[%s454_s1] sm:$0xff]  ;;  %v26_v1 = vld [vmem:[%s454_s1 + $0x8] sm:$0xff]  ;;  %v27_v2 = vld [vmem:[%s454_s1 + $0x10] sm:$0xff]  ;;  %288 = vmatprep.subr.bf16.mxu0 %v346_v3  ;;  %250 = vmatprep.mubr.msk.f32.mxu0 %vm347_vm0, %v348_v6 }
   0x2   :  { %v289_v4 = vpack.c.bf16 %v26_v1, %v25_v0  ;;  %v28_v5 = vld [vmem:[%s454_s1 + $0x18] sm:$0xff]  ;;  %v109_v7 = vld [vmem:[%s455_s2] sm:$0xff]  ;;  %294 = vmatprep.subr.bf16.mxu1 %v346_v3  ;;  %v110_v8 = vld [vmem:[%s455_s2 + $0x8] sm:$0xff]  ;;  %285 = vmatprep.mubr.msk.f32.mxu1 %vm347_vm0, %v348_v6 }
   0x3   :  { %v111_v9 = vld [vmem:[%s455_s2 + $0x10] sm:$0xff]  ;;  %v112_v10 = vld [vmem:[%s455_s2 + $0x18] sm:$0xff]  ;;  %v292_v11 = vpack.c.bf16 %v28_v5, %v27_v2  ;;  %v295_v12 = vpack.c.bf16 %v110_v8, %v109_v7  ;;  %v113_v14 = vld [vmem:[%s455_s2 + $0x20] sm:$0xff] }
   0x4   :  { %290 = vmatpush3.bf16.msra.mxu0 %v289_v4  ;;  %v298_v13 = vpack.c.bf16 %v112_v10, %v111_v9  ;;  %v114_v15 = vld [vmem:[%s455_s2 + $0x28] sm:$0xff]  ;;  %v24_v16 = vld [vmem:[%s453_s0] sm:$0xff] }
   0x5   :  { %291 = vmatprep.subr.bf16.mxu0 %v346_v3  ;;  %296 = vmatpush3.bf16.msra.mxu1 %v295_v12 }
   0x6   :  { %297 = vmatprep.subr.bf16.mxu1 %v346_v3 }
   0x8   :  { %293 = vmatpush3.bf16.msra.mxu0 %v292_v11 }
   0x9   :  { %9 = vsyncpa [#allocation4], 0  ;;  %299 = vmatpush3.bf16.msra.mxu1 %v298_v13  ;;  %v301_v17 = vpack.c.bf16 %v114_v15, %v113_v14  ;;  %v115_v18 = vld [vmem:[%s455_s2 + $0x30] sm:$0xff]  ;;  %v116_v19 = vld [vmem:[%s455_s2 + $0x38] sm:$0xff]  ;;  %s349_s1 = smov [#allocation3]   ;;  %vm202_vm2 = vcmask 130048  }
   0xa   :  { %300 = vmatprep.subr.bf16.mxu1 %v346_v3  ;;  %v304_v20 = vpack.c.bf16 %v116_v19, %v115_v18  ;;  %v117_v21 = vld [vmem:[%s455_s2 + $0x40] sm:$0xff]  ;;  %v118_v22 = vld [vmem:[%s455_s2 + $0x48] sm:$0xff]  ;;  %v119_v24 = vld [vmem:[%s455_s2 + $0x50] sm:$0xff]  ;;  %s210_s5 = sshll.u32 %s349_s1, 4  ;;  %s211_s5 = int_to_ptr.vmem [resolvable:$true] %s210_s5 }
   0xb   :  { %251 = vmatmul.mubr.msk.f32.vlgmr.msra.gmra.mrb[0].mxu0 %vm29_vm1, %v24_v16  ;;  %v307_v23 = vpack.c.bf16 %v118_v22, %v117_v21  ;;  %v120_v25 = vld [vmem:[%s455_s2 + $0x58] sm:$0xff]  ;;  %v121_v27 = vld [vmem:[%s455_s2 + $0x60] sm:$0xff]  ;;  %v122_v28 = vld [vmem:[%s455_s2 + $0x68] sm:$0xff]  ;;  %p327_p1 = scmp.lt.s32.totalorder %s211_s5, %s211_s5 }
   0xc   :  { %v310_v26 = vpack.c.bf16 %v120_v25, %v119_v24  ;;  %v313_v29 = vpack.c.bf16 %v122_v28, %v121_v27  ;;  %v123_v30 = vld [vmem:[%s455_s2 + $0x70] sm:$0xff]  ;;  %v124_v31 = vld [vmem:[%s455_s2 + $0x78] sm:$0xff]  ;;  %v219_v35 = vld [vmem:[%s456_s3] ss:$0 sm:$0xff]  ;;  %s322_s2 = scalar_lea.vmem %s211_s5, 128 }
   0xd   :  { %302 = vmatpush3.bf16.msra.mxu1 %v301_v17  ;;  %v316_v32 = vpack.c.bf16 %v124_v31, %v123_v30  ;;  %p323_p0 = scmp.ne.s32.totalorder %s211_s5, %s322_s2  ;;  %p328_p2 = scmp.lt.s32.totalorder %s322_s2, %s322_s2 }
   0xe   :  { %303 = vmatprep.subr.bf16.mxu1 %v346_v3 }
   0xf   :  { %p329_p3 = por %p328_p2, %p327_p1 }
  0x11   :  { %305 = vmatpush3.bf16.msra.mxu1 %v304_v20  ;;  %p330_p4 = pnand %p329_p3, %p323_p0 }
  0x12   :  { %306 = vmatprep.subr.bf16.mxu1 %v346_v3 }
  0x15   :  { %308 = vmatpush3.bf16.msra.mxu1 %v307_v23 }
  0x16   :  { %309 = vmatprep.subr.bf16.mxu1 %v346_v3 }
  0x19   :  { %311 = vmatpush3.bf16.msra.mxu1 %v310_v26 }
  0x1a   :  { %312 = vmatprep.subr.bf16.mxu1 %v346_v3 }
  0x1d   :  { %314 = vmatpush3.bf16.msra.mxu1 %v313_v29 }
  0x1e   :  { %315 = vmatprep.subr.bf16.mxu1 %v346_v3 }
  0x21   :  { %317 = vmatpush3.bf16.msra.mxu1 %v316_v32 }
  0xde   :  { %v99_v33 = vpop.f32.mrb[0].mxu0 }
  0xdf   :  { %v252_v34 = vpop.f32.mrb[1].mxu0  ;;  %286 = vmatmul.mubr.f32.vlgmr.msra.gmra.mrb[0].mxu1 %v99_v33 }
 0x1b2   :  { %v198_v36 = vpop.f32.mrb[0].mxu1 }
 0x1b3   :  { %v199_v37 = vadd.f32 %v219_v35, %v198_v36  ;;  %v287_v38 = vpop.f32.mrb[1].mxu1 }
 0x1b5   :  { %203 = vst.msk [vmem:[#allocation3] sm:$0xff] %vm202_vm2, %v199_v37 }
 0x1b6   :  { %333 = shalt.err (!%p330_p4)
}
 0x1b7   :  { %s334_s8 = scalar_lea.hbm %s457_s4, 128 }
 0x1b8   :  { %p335_p5 = scmp.ne.s32.totalorder %s457_s4, %s334_s8  ;;  %p338_p6 = scmp.lt.u32.totalorder %s334_s8, %s457_s4 }
 0x1ba   :  { %p340_p7 = pnand %p338_p6, %p335_p5 }
 0x1bc   :  { %343 = shalt.err (!%p340_p7)
}
 0x1bd   :  { %213 = dma.vmem_to_hbm [thread:$0]  %s211_s5, 128, %s457_s4, [#allocation4]  }
 0x1be   :  { %344 = dma.done.wait [#allocation4], 128  }
 0x1bf   :  { %345 = vsyncadd [#allocation4], 4294967168 }
 0x1c0   :  { %217 = vsyncpa [#allocation4], 1 }

</bundles_post_ra>
